<compile_context>
chip_gen: v7x
topology: tpu7x:2x2x1
jax: 0.10.0
libtpu: 0.0.40
codegen_flags: <defaults>
</compile_context>

<pallas_src>
import jax
import jax.numpy as jnp
from jax.experimental import pallas as pl
from jax.experimental.pallas import tpu as pltpu


def _make_pam_kernel(scale, compute_dtype):
    cd = compute_dtype

    def kernel(x_cm_ref, x_tm_ref, wq_ref, bq_ref, wkT_ref, bk_ref,
               wv_ref, bv_ref, wo_ref, out_ref):
        x_cm = x_cm_ref[0]                       # (Cin, L)  channel-major
        x_tm = x_tm_ref[0]                       # (L, Cin)  token-major

        # 1x1-conv projections (BN already folded into wq/bq and wk/bk).
        # Q and V channel-major (lane-dense), K token-major so the score
        # matmul below is a standard (L, Ck) @ (Ck, L) dot.
        q_t = jnp.dot(wq_ref[...], x_cm,
                      preferred_element_type=jnp.float32) + bq_ref[...]   # (Ck, L)
        k = jnp.dot(x_tm, wkT_ref[...],
                    preferred_element_type=jnp.float32) + bk_ref[...]     # (L, Ck)
        v_t = jnp.dot(wv_ref[...], x_cm,
                      preferred_element_type=jnp.float32) + bv_ref[...]   # (Cv, L)

        # Scores, stored transposed: sim_t[key, query].
        sim_t = jnp.dot(k.astype(cd), q_t.astype(cd),
                        preferred_element_type=jnp.float32) * scale       # (L, L)

        # Softmax over keys (sublane axis), in f32.
        m = jnp.max(sim_t, axis=0, keepdims=True)
        e = jnp.exp(sim_t - m)
        attn_t = e / jnp.sum(e, axis=0, keepdims=True)                    # (L, L)

        # Context (channel-major) and final 1x1 conv (conv_bn, bias=False).
        ctx_t = jnp.dot(v_t.astype(cd), attn_t.astype(cd),
                        preferred_element_type=jnp.float32)               # (Cv, L)
        out_t = jnp.dot(wo_ref[...].astype(cd), ctx_t.astype(cd),
                        preferred_element_type=jnp.float32)               # (Cout, L)
        out_ref[0] = out_t.astype(out_ref.dtype)

    return kernel


def _fold_bn(w, b, gamma, beta, mean, var, eps=1e-5):
    """Fold inference BatchNorm into a preceding 1x1 conv (weight (O, I), bias (O,))."""
    s = gamma / jnp.sqrt(var + eps)
    return w * s[:, None], (b - mean) * s + beta


def pam_forward(x, params, *, compute_dtype=jnp.float32, eps=1e-5):
    """PAM forward (sizes=[1], ds=1). x: (N, Cin, H, 2W) float32, NCHW."""
    N, Cin, H, W2 = x.shape
    L = H * W2

    wq, bq = _fold_bn(params["wq"], params["bq"], params["gq"], params["betaq"],
                      params["mq"], params["vq"], eps)
    wk, bk = _fold_bn(params["wk"], params["bk"], params["gk"], params["betak"],
                      params["mk"], params["vk"], eps)
    wv, bv = params["wv"], params["bv"]
    wo = params["wo"]
    Ck, Cv, Cout = wq.shape[0], wv.shape[0], wo.shape[0]
    scale = float(Ck) ** -0.5

    # Channel-major (Cin, L) and token-major (L, Cin) views of the input.
    # MXU operands go in compute_dtype; biases stay f32.
    x_cm = x.reshape(N, Cin, L).astype(compute_dtype)
    x_tm = jnp.transpose(x_cm, (0, 2, 1))

    kernel = _make_pam_kernel(scale, compute_dtype)
    out_cm = pl.pallas_call(
        kernel,
        out_shape=jax.ShapeDtypeStruct((N, Cout, L), jnp.float32),
        grid_spec=pltpu.PrefetchScalarGridSpec(
            num_scalar_prefetch=0,
            grid=(N,),
            in_specs=[
                pl.BlockSpec((1, Cin, L), lambda b: (b, 0, 0)),   # x channel-major
                pl.BlockSpec((1, L, Cin), lambda b: (b, 0, 0)),   # x token-major
                pl.BlockSpec((Ck, Cin), lambda b: (0, 0)),        # Wq (BN folded)
                pl.BlockSpec((Ck, 1), lambda b: (0, 0)),          # bq
                pl.BlockSpec((Cin, Ck), lambda b: (0, 0)),        # Wk^T (BN folded)
                pl.BlockSpec((1, Ck), lambda b: (0, 0)),          # bk
                pl.BlockSpec((Cv, Cin), lambda b: (0, 0)),        # Wv
                pl.BlockSpec((Cv, 1), lambda b: (0, 0)),          # bv
                pl.BlockSpec((Cout, Cv), lambda b: (0, 0)),       # conv_bn weight
            ],
            out_specs=pl.BlockSpec((1, Cout, L), lambda b: (b, 0, 0)),
        ),
        compiler_params=pltpu.CompilerParams(
            dimension_semantics=("parallel",),
            vmem_limit_bytes=32 * 1024 * 1024),
    )(x_cm, x_tm,
      wq.astype(compute_dtype), bq.reshape(Ck, 1).astype(jnp.float32),
      jnp.transpose(wk).astype(compute_dtype), bk.reshape(1, Ck).astype(jnp.float32),
      wv.astype(compute_dtype), bv.reshape(Cv, 1).astype(jnp.float32),
      wo.astype(compute_dtype))

    return out_cm.reshape(N, Cout, H, W2)


def pam_reference(x, params, eps=1e-5):
    """Pure-JAX reference following the PyTorch code path (scale=1, ds=1)."""
    N, C, H, W2 = x.shape
    w = W2 // 2

    def conv1x1(t, W, b=None):
        y = jnp.einsum("nchw,oc->nohw", t, W)
        return y if b is None else y + b[None, :, None, None]

    def bn(t, gamma, beta, mean, var):
        s = gamma / jnp.sqrt(var + eps)
        return t * s[None, :, None, None] + (beta - mean * s)[None, :, None, None]

    value = conv1x1(x, params["wv"], params["bv"])
    query = bn(conv1x1(x, params["wq"], params["bq"]),
               params["gq"], params["betaq"], params["mq"], params["vq"])
    key = bn(conv1x1(x, params["wk"], params["bk"]),
             params["gk"], params["betak"], params["mk"], params["vk"])

    def stack2(t):
        return jnp.stack([t[:, :, :, :w], t[:, :, :, w:]], axis=4)

    value, query, key = stack2(value), stack2(query), stack2(key)
    Cv, Ck = value.shape[1], query.shape[1]
    v_l = value.reshape(N, Cv, -1)
    q_l = jnp.transpose(query.reshape(N, Ck, -1), (0, 2, 1))
    k_l = key.reshape(N, Ck, -1)
    sim = jnp.einsum("nlc,ncm->nlm", q_l, k_l) * (Ck ** -0.5)
    sim = jax.nn.softmax(sim, axis=-1)
    ctx = jnp.einsum("ncm,nlm->ncl", v_l, sim)
    ctx = ctx.reshape(N, Cv, H, w, 2)
    ctx = jnp.concatenate([ctx[..., 0], ctx[..., 1]], axis=3)   # (N, Cv, H, 2w)
    return jnp.einsum("nchw,oc->nohw", ctx, params["wo"])


if __name__ == "__main__":
    # PAM input is N x Cin x H x (2W); conv_bn in PAM implies out_channels == in_channels.
    N, Cin, H, W = 2, 16, 8, 8
    Cout = Cin
    Ck, Cv = Cout // 8, Cout            # key_channels, value_channels (PAM defaults)

    keys = jax.random.split(jax.random.PRNGKey(0), 16)
    x = jax.random.normal(keys[0], (N, Cin, H, 2 * W), jnp.float32)

    params = dict(
        wq=0.3 * jax.random.normal(keys[1], (Ck, Cin), jnp.float32),
        bq=0.1 * jax.random.normal(keys[2], (Ck,), jnp.float32),
        wk=0.3 * jax.random.normal(keys[3], (Ck, Cin), jnp.float32),
        bk=0.1 * jax.random.normal(keys[4], (Ck,), jnp.float32),
        wv=0.3 * jax.random.normal(keys[5], (Cv, Cin), jnp.float32),
        bv=0.1 * jax.random.normal(keys[6], (Cv,), jnp.float32),
        wo=0.3 * jax.random.normal(keys[7], (Cout, Cv), jnp.float32),
        # BatchNorm (inference / running stats) for f_query and f_key.
        gq=1.0 + 0.1 * jax.random.normal(keys[8], (Ck,), jnp.float32),
        betaq=0.1 * jax.random.normal(keys[9], (Ck,), jnp.float32),
        mq=0.1 * jax.random.normal(keys[10], (Ck,), jnp.float32),
        vq=jnp.abs(jax.random.normal(keys[11], (Ck,), jnp.float32)) + 0.5,
        gk=1.0 + 0.1 * jax.random.normal(keys[12], (Ck,), jnp.float32),
        betak=0.1 * jax.random.normal(keys[13], (Ck,), jnp.float32),
        mk=0.1 * jax.random.normal(keys[14], (Ck,), jnp.float32),
        vk=jnp.abs(jax.random.normal(keys[15], (Ck,), jnp.float32)) + 0.5,
    )

    ref = pam_reference(x, params)

    # f32 MXU path — tight correctness check.
    out = jax.block_until_ready(pam_forward(x, params))
    assert out.shape == (N, Cout, H, 2 * W)
    max_err = float(jnp.max(jnp.abs(out - ref)))
    assert jnp.allclose(out, ref, rtol=1e-3, atol=1e-3), f"max abs err = {max_err}"

    # bf16 MXU operands (v6e/v7x fast path); softmax/bias/accum stay f32.
    out_bf16 = jax.block_until_ready(
        pam_forward(x, params, compute_dtype=jnp.bfloat16))
    rel = float(jnp.max(jnp.abs(out_bf16 - ref)) / (jnp.max(jnp.abs(ref)) + 1e-6))
    assert rel < 0.15, f"bf16 normalized max err = {rel}"

    print("KERNEL_OK")
</pallas_src>

<mosaic_0001>
module attributes {stable_mosaic.version = 11 : i64} {
  func.func @kernel(%arg0: i32, %arg1: memref<1x16x128xf32, #tpu.memory_space<vmem>>, %arg2: memref<1x128x16xf32, #tpu.memory_space<vmem>>, %arg3: memref<2x16xf32, #tpu.memory_space<vmem>>, %arg4: memref<2x1xf32, #tpu.memory_space<vmem>>, %arg5: memref<16x2xf32, #tpu.memory_space<vmem>>, %arg6: memref<1x2xf32, #tpu.memory_space<vmem>>, %arg7: memref<16x16xf32, #tpu.memory_space<vmem>>, %arg8: memref<16x1xf32, #tpu.memory_space<vmem>>, %arg9: memref<16x16xf32, #tpu.memory_space<vmem>>, %arg10: memref<1x16x128xf32, #tpu.memory_space<vmem>>) attributes {dimension_semantics = [#tpu.dimension_semantics<parallel>], iteration_bounds = array<i64: 2>, scalar_prefetch = 0 : i64, scratch_operands = 0 : i64, tpu.core_type = #tpu.core_type<tc>, window_params = [{transform_indices = @transform_0, window_bounds = array<i64: 1, 16, 128>}, {transform_indices = @transform_1, window_bounds = array<i64: 1, 128, 16>}, {pipeline_mode = #tpu.pipeline_mode<synchronous>, transform_indices = @transform_2, window_bounds = array<i64: 2, 16>}, {pipeline_mode = #tpu.pipeline_mode<synchronous>, transform_indices = @transform_3, window_bounds = array<i64: 2, 1>}, {pipeline_mode = #tpu.pipeline_mode<synchronous>, transform_indices = @transform_4, window_bounds = array<i64: 16, 2>}, {pipeline_mode = #tpu.pipeline_mode<synchronous>, transform_indices = @transform_5, window_bounds = array<i64: 1, 2>}, {pipeline_mode = #tpu.pipeline_mode<synchronous>, transform_indices = @transform_6, window_bounds = array<i64: 16, 16>}, {pipeline_mode = #tpu.pipeline_mode<synchronous>, transform_indices = @transform_7, window_bounds = array<i64: 16, 1>}, {pipeline_mode = #tpu.pipeline_mode<synchronous>, transform_indices = @transform_8, window_bounds = array<i64: 16, 16>}, {transform_indices = @transform_9, window_bounds = array<i64: 1, 16, 128>}]} {
    %c0 = arith.constant 0 : index
    %c0_0 = arith.constant 0 : index
    %c0_1 = arith.constant 0 : index
    %0 = vector.load %arg1[%c0, %c0_0, %c0_1] : memref<1x16x128xf32, #tpu.memory_space<vmem>>, vector<1x16x128xf32>
    %1 = vector.shape_cast %0 : vector<1x16x128xf32> to vector<16x128xf32>
    %c0_2 = arith.constant 0 : index
    %c0_3 = arith.constant 0 : index
    %c0_4 = arith.constant 0 : index
    %2 = vector.load %arg2[%c0_2, %c0_3, %c0_4] : memref<1x128x16xf32, #tpu.memory_space<vmem>>, vector<1x128x16xf32>
    %3 = vector.shape_cast %2 : vector<1x128x16xf32> to vector<128x16xf32>
    %c0_5 = arith.constant 0 : index
    %c0_6 = arith.constant 0 : index
    %4 = vector.load %arg3[%c0_5, %c0_6] : memref<2x16xf32, #tpu.memory_space<vmem>>, vector<2x16xf32>
    %cst = arith.constant dense<0.000000e+00> : vector<2x128xf32>
    %5 = tpu.matmul %4, %1, %cst {dimension_numbers = #tpu.dot_dimension_numbers<[1], [0], [0], [1], [0, 0, 1, 1], [], []>} : vector<2x16xf32>, vector<16x128xf32>, vector<2x128xf32> -> vector<2x128xf32>
    %c0_7 = arith.constant 0 : index
    %c0_8 = arith.constant 0 : index
    %6 = vector.load %arg4[%c0_7, %c0_8] : memref<2x1xf32, #tpu.memory_space<vmem>>, vector<2x1xf32>
    %7 = vector.broadcast %6 : vector<2x1xf32> to vector<2x128xf32>
    %8 = arith.addf %5, %7 : vector<2x128xf32>
    %c0_9 = arith.constant 0 : index
    %c0_10 = arith.constant 0 : index
    %9 = vector.load %arg5[%c0_9, %c0_10] : memref<16x2xf32, #tpu.memory_space<vmem>>, vector<16x2xf32>
    %cst_11 = arith.constant dense<0.000000e+00> : vector<128x2xf32>
    %10 = tpu.matmul %3, %9, %cst_11 {dimension_numbers = #tpu.dot_dimension_numbers<[1], [0], [0], [1], [0, 0, 1, 1], [], []>} : vector<128x16xf32>, vector<16x2xf32>, vector<128x2xf32> -> vector<128x2xf32>
    %c0_12 = arith.constant 0 : index
    %c0_13 = arith.constant 0 : index
    %11 = vector.load %arg6[%c0_12, %c0_13] : memref<1x2xf32, #tpu.memory_space<vmem>>, vector<1x2xf32>
    %12 = vector.broadcast %11 : vector<1x2xf32> to vector<128x2xf32>
    %13 = arith.addf %10, %12 : vector<128x2xf32>
    %c0_14 = arith.constant 0 : index
    %c0_15 = arith.constant 0 : index
    %14 = vector.load %arg7[%c0_14, %c0_15] : memref<16x16xf32, #tpu.memory_space<vmem>>, vector<16x16xf32>
    %cst_16 = arith.constant dense<0.000000e+00> : vector<16x128xf32>
    %15 = tpu.matmul %14, %1, %cst_16 {dimension_numbers = #tpu.dot_dimension_numbers<[1], [0], [0], [1], [0, 0, 1, 1], [], []>} : vector<16x16xf32>, vector<16x128xf32>, vector<16x128xf32> -> vector<16x128xf32>
    %c0_17 = arith.constant 0 : index
    %c0_18 = arith.constant 0 : index
    %16 = vector.load %arg8[%c0_17, %c0_18] : memref<16x1xf32, #tpu.memory_space<vmem>>, vector<16x1xf32>
    %17 = vector.broadcast %16 : vector<16x1xf32> to vector<16x128xf32>
    %18 = arith.addf %15, %17 : vector<16x128xf32>
    %cst_19 = arith.constant dense<0.000000e+00> : vector<128x128xf32>
    %19 = tpu.matmul %13, %8, %cst_19 {dimension_numbers = #tpu.dot_dimension_numbers<[1], [0], [0], [1], [0, 0, 1, 1], [], []>} : vector<128x2xf32>, vector<2x128xf32>, vector<128x128xf32> -> vector<128x128xf32>
    %cst_20 = arith.constant 0.707106769 : f32
    %20 = vector.broadcast %cst_20 : f32 to vector<128x128xf32>
    %21 = arith.mulf %19, %20 : vector<128x128xf32>
    %cst_21 = arith.constant dense<0xFF800000> : vector<128xf32>
    %22 = vector.multi_reduction <maximumf>, %21, %cst_21 [0] : vector<128x128xf32> to vector<128xf32>
    %23 = vector.shape_cast %22 : vector<128xf32> to vector<1x128xf32>
    %24 = vector.broadcast %23 : vector<1x128xf32> to vector<128x128xf32>
    %25 = arith.subf %21, %24 : vector<128x128xf32>
    %26 = math.exp %25 : vector<128x128xf32>
    %cst_22 = arith.constant dense<0.000000e+00> : vector<128xf32>
    %27 = vector.multi_reduction <add>, %26, %cst_22 [0] : vector<128x128xf32> to vector<128xf32>
    %28 = vector.shape_cast %27 : vector<128xf32> to vector<1x128xf32>
    %29 = vector.broadcast %28 : vector<1x128xf32> to vector<128x128xf32>
    %30 = arith.divf %26, %29 : vector<128x128xf32>
    %cst_23 = arith.constant dense<0.000000e+00> : vector<16x128xf32>
    %31 = tpu.matmul %18, %30, %cst_23 {dimension_numbers = #tpu.dot_dimension_numbers<[1], [0], [0], [1], [0, 0, 1, 1], [], []>} : vector<16x128xf32>, vector<128x128xf32>, vector<16x128xf32> -> vector<16x128xf32>
    %c0_24 = arith.constant 0 : index
    %c0_25 = arith.constant 0 : index
    %32 = vector.load %arg9[%c0_24, %c0_25] : memref<16x16xf32, #tpu.memory_space<vmem>>, vector<16x16xf32>
    %cst_26 = arith.constant dense<0.000000e+00> : vector<16x128xf32>
    %33 = tpu.matmul %32, %31, %cst_26 {dimension_numbers = #tpu.dot_dimension_numbers<[1], [0], [0], [1], [0, 0, 1, 1], [], []>} : vector<16x16xf32>, vector<16x128xf32>, vector<16x128xf32> -> vector<16x128xf32>
    %c0_27 = arith.constant 0 : index
    %c0_28 = arith.constant 0 : index
    %c0_29 = arith.constant 0 : index
    %34 = vector.load %arg10[%c0_27, %c0_28, %c0_29] : memref<1x16x128xf32, #tpu.memory_space<vmem>>, vector<1x16x128xf32>
    %35 = vector.shape_cast %34 : vector<1x16x128xf32> to vector<16x128xf32>
    %36 = vector.shape_cast %33 : vector<16x128xf32> to vector<1x16x128xf32>
    tpu.vector_store %arg10[%c0_27, %c0_28, %c0_29], %36 {strides = array<i32>} : memref<1x16x128xf32, #tpu.memory_space<vmem>>, vector<1x16x128xf32>,
    return
  }
  func.func @transform_0(%arg0: i32) -> (i32, i32, i32) {
    %c0_i32 = arith.constant 0 : i32
    %c0_i32_0 = arith.constant 0 : i32
    %c0_i32_1 = arith.constant 0 : i32
    return %arg0, %c0_i32, %c0_i32_0 : i32, i32, i32
  }
  func.func @transform_1(%arg0: i32) -> (i32, i32, i32) {
    %c0_i32 = arith.constant 0 : i32
    %c0_i32_0 = arith.constant 0 : i32
    %c0_i32_1 = arith.constant 0 : i32
    return %arg0, %c0_i32, %c0_i32_0 : i32, i32, i32
  }
  func.func @transform_2(%arg0: i32) -> (i32, i32) {
    %c0_i32 = arith.constant 0 : i32
    %c0_i32_0 = arith.constant 0 : i32
    %c0_i32_1 = arith.constant 0 : i32
    return %c0_i32, %c0_i32_0 : i32, i32
  }
  func.func @transform_3(%arg0: i32) -> (i32, i32) {
    %c0_i32 = arith.constant 0 : i32
    %c0_i32_0 = arith.constant 0 : i32
    %c0_i32_1 = arith.constant 0 : i32
    return %c0_i32, %c0_i32_0 : i32, i32
  }
  func.func @transform_4(%arg0: i32) -> (i32, i32) {
    %c0_i32 = arith.constant 0 : i32
    %c0_i32_0 = arith.constant 0 : i32
    %c0_i32_1 = arith.constant 0 : i32
    return %c0_i32, %c0_i32_0 : i32, i32
  }
  func.func @transform_5(%arg0: i32) -> (i32, i32) {
    %c0_i32 = arith.constant 0 : i32
    %c0_i32_0 = arith.constant 0 : i32
    %c0_i32_1 = arith.constant 0 : i32
    return %c0_i32, %c0_i32_0 : i32, i32
  }
  func.func @transform_6(%arg0: i32) -> (i32, i32) {
    %c0_i32 = arith.constant 0 : i32
    %c0_i32_0 = arith.constant 0 : i32
    %c0_i32_1 = arith.constant 0 : i32
    return %c0_i32, %c0_i32_0 : i32, i32
  }
  func.func @transform_7(%arg0: i32) -> (i32, i32) {
    %c0_i32 = arith.constant 0 : i32
    %c0_i32_0 = arith.constant 0 : i32
    %c0_i32_1 = arith.constant 0 : i32
    return %c0_i32, %c0_i32_0 : i32, i32
  }
  func.func @transform_8(%arg0: i32) -> (i32, i32) {
    %c0_i32 = arith.constant 0 : i32
    %c0_i32_0 = arith.constant 0 : i32
    %c0_i32_1 = arith.constant 0 : i32
    return %c0_i32, %c0_i32_0 : i32, i32
  }
  func.func @transform_9(%arg0: i32) -> (i32, i32, i32) {
    %c0_i32 = arith.constant 0 : i32
    %c0_i32_0 = arith.constant 0 : i32
    %c0_i32_1 = arith.constant 0 : i32
    return %arg0, %c0_i32, %c0_i32_0 : i32, i32, i32
  }
}

</mosaic_0001>

<bundles_post_ra>
// kernel: tpu_custom_call.1
= control target key start
LH: loop header
LB: loop body
LE: loop exit
PB: predicated region body
PF: predicated region fallthrough
CT: control target
= control target key end

     0   :  { %14 = vsyncpa [#allocation3], 0  ;;  %s2044_s0 = inlined_call_operand.vmem [shape: f32[2,16,128], index: 0, kind: input, shape index: {}]   ;;  %s2045_s1 = inlined_call_operand.vmem [shape: f32[2,128,16], index: 1, kind: input, shape index: {}]   ;;  %s2046_s2 = inlined_call_operand.vmem [shape: f32[2,16], index: 2, kind: input, shape index: {}]   ;;  %s2047_s3 = inlined_call_operand.vmem [shape: f32[2,1], index: 3, kind: input, shape index: {}]   ;;  %s2048_s4 = inlined_call_operand.vmem [shape: f32[16,2], index: 4, kind: input, shape index: {}]   ;;  %s2049_s5 = inlined_call_operand.vmem [shape: f32[1,2], index: 5, kind: input, shape index: {}]   ;;  %s2050_s6 = inlined_call_operand.vmem [shape: f32[16,16], index: 6, kind: input, shape index: {}]   ;;  %s2051_s7 = inlined_call_operand.vmem [shape: f32[16,1], index: 7, kind: input, shape index: {}]   ;;  %s2052_s8 = inlined_call_operand.vmem [shape: f32[16,16], index: 8, kind: input, shape index: {}]   ;;  %s2053_s9 = inlined_call_operand.hbm [shape: f32[2,16,128], index: 9, kind: output, shape index: {}]  }
   0x1   :  { %16 = vsyncpa [#allocation3 + $0x1], 0  ;;  %s1795_s30 = smov 0   ;;  %s1797_s10 = smov 0  }
   0x2   :  { %s1799_s11 = smov 0   ;;  %s1801_s12 = smov 0  }
   0x3 LB: > { %s1816_s13 = sadd.s32 4294967295, %s1736_s12   ;;  %s1316_s14 = sadd.s32 4294967294, %s1736_s12   ;;  %s1736_s12 = sphi %s1801_s12, %s2059_s12   ;;  %s1732_s11 = sphi %s1799_s11, %s2058_s11   ;;  %s1728_s10 = sphi %s1797_s10, %s2057_s10   ;;  %s1724_s30 = sphi %s1795_s30, %s2056_s30  }
   0x4   : > { %s1820_s15 = sadd.s32 1, %s1736_s12   ;;  %s228_s16 = sadd.s32 1, %s1732_s11 }
   0x5   : > { %s225_s17 = ssub.s32 %s1736_s12, %s1820_s15  ;;  %p238_p0 = scmp.ne.s32.totalorder %s1732_s11, %s1728_s10 }
   0x6   : > { %p226_p1 = scmp.eq.s32.totalorder %s225_s17, 0  ;;  %p239_p2 = scmp.eq.s32.totalorder %s1816_s13, 1 }
   0x7   : > { %p244_p3 = scmp.ne.s32.totalorder %s1728_s10, %s1724_s30  ;;  %p245_p4 = scmp.eq.s32.totalorder %s1316_s14, 1 }
   0x8   : > { %s1831_s18 = scalar_select %p226_p1, %s1732_s11, %s228_s16  }
   0x9   : > { %p1833_p5 = por %p239_p2, %p238_p0  ;;  %p1837_p6 = por %p245_p4, %p244_p3 }
   0xa   : > { %p1319_p7 = scmp.ge.s32.totalorder %s1736_s12, 1  ;;  %p300_p8 = scmp.lt.s32.totalorder %s1736_s12, 3 }
   0xc   : > { %p301_p9 = pnand %p1319_p7, %p300_p8 }
   0xd   : > { %v450_v0 = vld [vmem:[%s2048_s4] sm:$0xff] (!%p301_p9)  ;;  %v451_v1 = vld [vmem:[%s2048_s4 + $0x8] sm:$0xff] (!%p301_p9)  ;;  %p341_p10 = scmp.lt.s32.totalorder (!%p301_p9), %s1816_s13, 1  ;;  %v1738_v2 = vmov (!%p301_p9), 0.0|0.0   ;;  %vm1739_vm0 = vmmov (!%p301_p9), 0   ;;  %v1740_v4 = vmov (!%p301_p9), 0.0  }
   0xe   : > { %304 = sbr.rel (%p301_p9) target bundleno = 1062 (0x426), region = 56  ;;  %1546 = vmatprep.subr.bf16.mxu0 (!%p301_p9), %v1738_v2  ;;  %v1549_v3 = vpack.c.bf16 (!%p301_p9), %v451_v1, %v450_v0  ;;  %1440 = vmatprep.mubr.msk.f32.mxu0 (!%p301_p9), %vm1739_vm0, %v1740_v4  ;;  %v1741_v5 = vmov (!%p301_p9), 0   ;;  %v370_v6 = vld [vmem:[%s2047_s3] sm:$0x3] (!%p301_p9)  ;;  %vm376_vm1 = vcmask (!%p301_p9), 130048   ;;  %v653_v18 = vld [vmem:[%s2050_s6 + $0x8] sm:$0xff] (!%p301_p9) }
   0xf   : > { %1638 = vset.pattern.permute.xlu0 (!%p301_p9), %v1741_v5  ;;  %1639 = vset.pattern.permute.xlu1 (!%p301_p9), %v1741_v5  ;;  %v654_v7 = vld [vmem:[%s2051_s7] sm:$0xff] (!%p301_p9)  ;;  %v655_v30 = vld [vmem:[%s2051_s7 + $0x8] sm:$0xff] (!%p301_p9)  ;;  %vm747_vm2 = vcmask (!%p301_p9), 15360   ;;  %vm796_vm3 = vcmask (!%p301_p9), 1041408   ;;  %s1371_s17 = sshll.u32 (!%p301_p9), %s1816_s13, 8 }
  0x10   : > { %1550 = vmatprep.subr.bf16.mxu1 (!%p301_p9), %v1549_v3  ;;  %373 = vperm.xlu0 (!%p301_p9), %1638, %v370_v6   ;;  %v369_v14 = vld [vmem:[%s2046_s2] sm:$0x3] (!%p301_p9)  ;;  %s2001_s23 = scalar_lea.hbm (!%p301_p9), %s2053_s9, %s1371_s17 }
  0x11   : > { %1552 = vmatpush3.bf16.msra.mxu1 (!%p301_p9), %v1549_v3  ;;  %v652_v16 = vld [vmem:[%s2050_s6] sm:$0xff] (!%p301_p9)  ;;  %663 = vperm.xlu1 (!%p301_p9), %1639, %v655_v30  }
  0x12   : > { %v1326_v31 = vld [vmem:[%s2049_s5] ss:$0 sm:$0xff] (!%p301_p9) }
  0x14   : > { %658 = vperm.xlu0 (!%p301_p9), %1638, %v654_v7  }
  0x15   : > { %s342_s25 = scalar_select %p341_p10, %s1816_s13, 1 }
  0x16   : > { %s1742_s13 = smov [#allocation2]  }
  0x17   : > { %s1369_s28 = sshll.u32 %s342_s25, 4  ;;  %s1370_s29 = sshll.u32 %s342_s25, 7 }
  0x18   : > { %s345_s22 = scalar_lea.vmem %s2044_s0, %s1369_s28  ;;  %s1863_s26 = scalar_lea.vmem %s2045_s1, %s1370_s29 }
  0x19   : > { %v351_v8 = vld [vmem:[%s345_s22] sm:$0xff]  ;;  %v352_v9 = vld [vmem:[%s345_s22 + $0x8] sm:$0xff]  ;;  %v355_v13 = vld [vmem:[%s1863_s26 + $0x10] sm:$0xff]  ;;  %s338_s28 = sand.u32 1, %s1728_s10   ;;  %s1678_s25 = sshll.u32 %s1742_s13, 4  ;;  %s1679_s25 = int_to_ptr.vmem [resolvable:$false] %s1678_s25 }
  0x1a   : > { %v353_v10 = vld [vmem:[%s1863_s26] sm:$0xff]  ;;  %v1547_v11 = vpack.c.bf16 %v352_v9, %v351_v8  ;;  %v354_v12 = vld [vmem:[%s1863_s26 + $0x8] sm:$0xff]  ;;  %v356_v15 = vld [vmem:[%s1863_s26 + $0x18] sm:$0xff]  ;;  %s1320_s29 = sshll.u32 %s338_s28, 4  ;;  %s2003_s24 = scalar_lea.sflag [#allocation3], %s338_s28 }
  0x1b   : > { %1447 = vmatprep.mubr.msk.f32.mxu1 %vm376_vm1, %v353_v10  ;;  %v357_v17 = vld [vmem:[%s1863_s26 + $0x20] sm:$0xff]  ;;  %v358_v19 = vld [vmem:[%s1863_s26 + $0x28] sm:$0xff]  ;;  %v359_v20 = vld [vmem:[%s1863_s26 + $0x30] sm:$0xff]  ;;  %s340_s14 = scalar_lea.vmem [#allocation2], %s1320_s29  ;;  %s1680_s27 = scalar_lea.vmem %s1679_s25, 512 }
  0x1c   : > { %1448 = vmatmul.mubr.msk.f32.vlgmr.msra.gmra.mrb[0].mxu1 %vm376_vm1, %v354_v12  ;;  %1548 = vmatpush3.bf16.msra.mxu0 %v1547_v11  ;;  %v360_v21 = vld [vmem:[%s1863_s26 + $0x38] sm:$0xff]  ;;  %v361_v22 = vld [vmem:[%s1863_s26 + $0x40] sm:$0xff]  ;;  %v362_v23 = vld [vmem:[%s1863_s26 + $0x48] sm:$0xff]  ;;  %s1242_s16 = sshll.u32 %s340_s14, 4  ;;  %s1996_s16 = int_to_ptr.vmem [resolvable:$true] %s1242_s16 }
  0x1d   : > { %1450 = vmatprep.mubr.msk.f32.mxu1 %vm376_vm1, %v355_v13  ;;  %1554 = vmatprep.subr.bf16.mxu0 %v1547_v11  ;;  %v363_v24 = vld [vmem:[%s1863_s26 + $0x50] sm:$0xff]  ;;  %v364_v25 = vld [vmem:[%s1863_s26 + $0x58] sm:$0xff]  ;;  %v365_v26 = vld [vmem:[%s1863_s26 + $0x60] sm:$0xff]  ;;  %p1681_p0 = scmp.lt.s32.totalorder %s1996_s16, %s1679_s25 }
  0x1e   : > { %v366_v27 = vld [vmem:[%s1863_s26 + $0x68] sm:$0xff]  ;;  %v367_v28 = vld [vmem:[%s1863_s26 + $0x70] sm:$0xff]  ;;  %v368_v29 = vld [vmem:[%s1863_s26 + $0x78] sm:$0xff]  ;;  %s1674_s26 = scalar_lea.vmem %s1996_s16, 256 }
  0x1f   : > { %1441 = vmatmul.mubr.msk.f32.vlgmr.msra.gmra.mrb[0].mxu0 %vm376_vm1, %v369_v14  ;;  %p1675_p11 = scmp.ne.s32.totalorder %s1996_s16, %s1674_s26  ;;  %p1682_p1 = scmp.lt.s32.totalorder %s1680_s27, %s1674_s26 }
  0x20   : > { %1451 = vmatmul.mubr.msk.f32.gmra.mrb[2].mxu1 %vm376_vm1, %v356_v15  ;;  %1556 = vmatpush3.bf16.msra.mxu0 %v1547_v11 }
  0x21   : > { %1475 = vmatprep.mubr.msk.f32.mxu0 %vm376_vm1, %v652_v16  ;;  %1453 = vmatprep.mubr.msk.f32.mxu1 %vm376_vm1, %v357_v17  ;;  %p1676_p12 = pnand %p1675_p11, %p1833_p5  ;;  %p1683_p2 = por %p1682_p1, %p1681_p0 }
  0x23   : > { %1476 = vmatmul.mubr.msk.f32.vlgmr.msra.gmra.mrb[2].mxu0 %vm376_vm1, %v653_v18  ;;  %p1677_p13 = pneg %p1676_p12 }
  0x24   : > { %1454 = vmatmul.mubr.msk.f32.gmra.mrb[4].mxu1 %vm376_vm1, %v358_v19 }
  0x25   : > { %1456 = vmatprep.mubr.msk.f32.mxu1 %vm376_vm1, %v359_v20  ;;  %p1684_p3 = pnand %p1683_p2, %p1677_p13 }
  0x28   : > { %1457 = vmatmul.mubr.msk.f32.gmra.mrb[6].mxu1 %vm376_vm1, %v360_v21 }
  0x29   : > { %1459 = vmatprep.mubr.msk.f32.mxu1 %vm376_vm1, %v361_v22 }
  0x2c   : > { %1460 = vmatmul.mubr.msk.f32.gmra.mrb[8].mxu1 %vm376_vm1, %v362_v23 }
  0x2d   : > { %1462 = vmatprep.mubr.msk.f32.mxu1 %vm376_vm1, %v363_v24 }
  0x30   : > { %1463 = vmatmul.mubr.msk.f32.gmra.mrb[10].mxu1 %vm376_vm1, %v364_v25 }
  0x31   : > { %1465 = vmatprep.mubr.msk.f32.mxu1 %vm376_vm1, %v365_v26 }
  0x34   : > { %1466 = vmatmul.mubr.msk.f32.gmra.mrb[12].mxu1 %vm376_vm1, %v366_v27 }
  0x35   : > { %1468 = vmatprep.mubr.msk.f32.mxu1 %vm376_vm1, %v367_v28 }
  0x38   : > { %1469 = vmatmul.mubr.msk.f32.gmra.mrb[14].mxu1 %vm376_vm1, %v368_v29 }
  0x8f   : > { %v374_v33 = vpop.permute.xlu0 %373 }
  0x93   : > { %v659_v42 = vpop.permute.xlu0 %658 }
  0xef   : > { %v1449_v32 = vpop.f32.mrb[0].mxu1 }
  0xf0   : > { %v573_v34 = vpop.f32.mrb[1].mxu1  ;;  %v579_v43 = vadd.f32 %v1449_v32, %v1326_v31 }
  0xf1   : > { %v574_v35 = vadd.f32 %v1326_v31, %v573_v34 }
  0xf2   : > { %v446_v36 = vpop.f32.mrb[0].mxu0 }
  0xf3   : > { %v1452_v37 = vpop.f32.mrb[2].mxu1  ;;  %1480 = vmatprep.mubr.msk.f32.mxu0 %vm747_vm2, %v574_v35  ;;  %v447_v38 = vadd.f32 %v446_v36, %v374_v33  ;;  %v1442_v39 = vpop.f32.mrb[1].mxu0 }
  0xf4   : > { %v583_v40 = vpop.f32.mrb[3].mxu1  ;;  %v589_v50 = vadd.f32 %v1452_v37, %v1326_v31 }
  0xf5   : > { %v584_v41 = vadd.f32 %v1326_v31, %v583_v40  ;;  %1478 = vmatprep.subr.msk.mxu0 %vm796_vm3, %v447_v38 }
  0xf6   : > { %v1916_v44 = vpop.f32.mrb[2].mxu0  ;;  %1479 = vmatpush3.msk.msra.mxu0 %vm796_vm3, %v447_v38 }
  0xf7   : > { %v1455_v45 = vpop.f32.mrb[4].mxu1  ;;  %v738_v46 = vpop.f32.mrb[3].mxu0  ;;  %1481 = vmatmul.mubr.msk.f32.vlgmr.msra.gmra.mrb[4].mxu0 %vm747_vm2, %v579_v43 }
  0xf8   : > { %v593_v47 = vpop.f32.mrb[5].mxu1  ;;  %v739_v48 = vadd.f32 %v738_v46, %v659_v42  ;;  %1483 = vmatprep.mubr.msk.f32.mxu0 %vm747_vm2, %v584_v41  ;;  %v599_v54 = vadd.f32 %v1455_v45, %v1326_v31 }
  0xf9   : > { %v594_v49 = vadd.f32 %v1326_v31, %v593_v47 }
  0xfa   : > { %1536 = vmatprep.mubr.f32.mxu1 %v739_v48 }
  0xfb   : > { %v1458_v51 = vpop.f32.mrb[6].mxu1  ;;  %1484 = vmatmul.mubr.msk.f32.gmra.mrb[6].mxu0 %vm747_vm2, %v589_v50 }
  0xfc   : > { %v603_v52 = vpop.f32.mrb[7].mxu1  ;;  %1486 = vmatprep.mubr.msk.f32.mxu0 %vm747_vm2, %v594_v49  ;;  %v609_v58 = vadd.f32 %v1458_v51, %v1326_v31 }
  0xfd   : > { %v604_v53 = vadd.f32 %v1326_v31, %v603_v52 }
  0xff   : > { %v1461_v55 = vpop.f32.mrb[8].mxu1  ;;  %1487 = vmatmul.mubr.msk.f32.gmra.mrb[8].mxu0 %vm747_vm2, %v599_v54 }
 0x100   : > { %v613_v56 = vpop.f32.mrb[9].mxu1  ;;  %1489 = vmatprep.mubr.msk.f32.mxu0 %vm747_vm2, %v604_v53  ;;  %v619_v62 = vadd.f32 %v1461_v55, %v1326_v31 }
 0x101   : > { %v614_v57 = vadd.f32 %v1326_v31, %v613_v56 }
 0x103   : > { %v1464_v59 = vpop.f32.mrb[10].mxu1  ;;  %1490 = vmatmul.mubr.msk.f32.gmra.mrb[10].mxu0 %vm747_vm2, %v609_v58 }
 0x104   : > { %v623_v60 = vpop.f32.mrb[11].mxu1  ;;  %1492 = vmatprep.mubr.msk.f32.mxu0 %vm747_vm2, %v614_v57  ;;  %v629_v2 = vadd.f32 %v1464_v59, %v1326_v31 }
 0x105   : > { %v624_v61 = vadd.f32 %v1326_v31, %v623_v60 }
 0x107   : > { %v1467_v63 = vpop.f32.mrb[12].mxu1  ;;  %1493 = vmatmul.mubr.msk.f32.gmra.mrb[12].mxu0 %vm747_vm2, %v619_v62 }
 0x108   : > { %v633_v0 = vpop.f32.mrb[13].mxu1  ;;  %1495 = vmatprep.mubr.msk.f32.mxu0 %vm747_vm2, %v624_v61  ;;  %v639_v6 = vadd.f32 %v1467_v63, %v1326_v31 }
 0x109   : > { %v634_v1 = vadd.f32 %v1326_v31, %v633_v0 }
 0x10b   : > { %v1470_v3 = vpop.f32.mrb[14].mxu1  ;;  %1496 = vmatmul.mubr.msk.f32.gmra.mrb[14].mxu0 %vm747_vm2, %v629_v2 }
 0x10c   : > { %v643_v4 = vpop.f32.mrb[15].mxu1  ;;  %1498 = vmatprep.mubr.msk.f32.mxu0 %vm747_vm2, %v634_v1  ;;  %v649_v7 = vadd.f32 %v1470_v3, %v1326_v31 }
 0x10d   : > { %v644_v5 = vadd.f32 %v1326_v31, %v643_v4 }
 0x10f   : > { %1499 = vmatmul.mubr.msk.f32.gmra.mrb[16].mxu0 %vm747_vm2, %v639_v6 }
 0x110   : > { %1501 = vmatprep.mubr.msk.f32.mxu0 %vm747_vm2, %v644_v5 }
 0x113   : > { %1502 = vmatmul.mubr.msk.f32.gmra.mrb[18].mxu0 %vm747_vm2, %v649_v7 }
 0x1ca   : > { %v1482_v8 = vpop.f32.mrb[4].mxu0 }
 0x1cb   : > { %v866_v9 = vpop.f32.mrb[5].mxu0  ;;  %v1933_v13 = vmul.f32 0.70710677, %v1482_v8 }
 0x1cc   : > { %v945_v16 = vmul.f32 0.70710677, %v866_v9 }
 0x1ce   : > { %v1485_v10 = vpop.f32.mrb[6].mxu0 }
 0x1cf   : > { %v876_v11 = vpop.f32.mrb[7].mxu0  ;;  %v948_v21 = vmul.f32 0.70710677, %v1485_v10 }
 0x1d0   : > { %v947_v24 = vmul.f32 0.70710677, %v876_v11 }
 0x1d2   : > { %v1488_v12 = vpop.f32.mrb[8].mxu0 }
 0x1d3   : > { %v1935_v14 = vmul.f32 0.70710677, %v1488_v12  ;;  %v886_v15 = vpop.f32.mrb[9].mxu0 }
 0x1d4   : > { %v1937_v17 = vmul.f32 0.70710677, %v886_v15 }
 0x1d5   : > { %v962_v18 = vmax.f32 %v1933_v13, %v1935_v14 }
 0x1d6   : > { %v961_v19 = vmax.f32 %v945_v16, %v1937_v17  ;;  %v1491_v20 = vpop.f32.mrb[10].mxu0 }
 0x1d7   : > { %v1942_v22 = vmul.f32 0.70710677, %v1491_v20  ;;  %v896_v23 = vpop.f32.mrb[11].mxu0 }
 0x1d8   : > { %v1944_v25 = vmul.f32 0.70710677, %v896_v23 }
 0x1d9   : > { %v964_v26 = vmax.f32 %v948_v21, %v1942_v22 }
 0x1da   : > { %v963_v27 = vmax.f32 %v947_v24, %v1944_v25  ;;  %v1494_v28 = vpop.f32.mrb[12].mxu0 }
 0x1db   : > { %v1948_v29 = vmul.f32 0.70710677, %v1494_v28  ;;  %v906_v30 = vpop.f32.mrb[13].mxu0 }
 0x1dc   : > { %v1950_v31 = vmul.f32 0.70710677, %v906_v30 }
 0x1dd   : > { %v966_v32 = vmax.f32 %v962_v18, %v1948_v29 }
 0x1de   : > { %v965_v33 = vmax.f32 %v961_v19, %v1950_v31  ;;  %v1497_v34 = vpop.f32.mrb[14].mxu0 }
 0x1df   : > { %v1954_v35 = vmul.f32 0.70710677, %v1497_v34  ;;  %v916_v36 = vpop.f32.mrb[15].mxu0 }
 0x1e0   : > { %v1956_v37 = vmul.f32 0.70710677, %v916_v36 }
 0x1e1   : > { %v968_v38 = vmax.f32 %v964_v26, %v1954_v35 }
 0x1e2   : > { %v967_v39 = vmax.f32 %v963_v27, %v1956_v37  ;;  %v1500_v40 = vpop.f32.mrb[16].mxu0 }
 0x1e3   : > { %v1960_v41 = vmul.f32 0.70710677, %v1500_v40  ;;  %v926_v42 = vpop.f32.mrb[17].mxu0 }
 0x1e4   : > { %v1962_v43 = vmul.f32 0.70710677, %v926_v42 }
 0x1e5   : > { %v970_v45 = vmax.f32 %v966_v32, %v1960_v41 }
 0x1e6   : > { %v969_v46 = vmax.f32 %v965_v33, %v1962_v43  ;;  %v1503_v47 = vpop.f32.mrb[18].mxu0 }
 0x1e7   : > { %v1966_v48 = vmul.f32 0.70710677, %v1503_v47  ;;  %v936_v49 = vpop.f32.mrb[19].mxu0 }
 0x1e8   : > { %v973_v50 = vmax.f32 %v969_v46, %v970_v45  ;;  %v1968_v51 = vmul.f32 0.70710677, %v936_v49 }
 0x1e9   : > { %v972_v52 = vmax.f32 %v968_v38, %v1966_v48 }
 0x1ea   : > { %v971_v53 = vmax.f32 %v967_v39, %v1968_v51 }
 0x1ec   : > { %v974_v54 = vmax.f32 %v971_v53, %v972_v52 }
 0x1ee   : > { %v975_v55 = vmax.f32 %v973_v50, %v974_v54 }
 0x1f0   : > { %v976_v56 = vrot.slane %v975_v55, 4 }
 0x1f2   : > { %v977_v57 = vmax.f32 %v975_v55, %v976_v56 }
 0x1f4   : > { %v978_v58 = vrot.slane %v977_v57, 2 }
 0x1f6   : > { %v979_v59 = vmax.f32 %v977_v57, %v978_v58 }
 0x1f8   : > { %v980_v60 = vrot.slane %v979_v59, 1 }
 0x1fa   : > { %v981_v61 = vmax.f32 %v979_v59, %v980_v60 }
 0x1fc   : > { %v982_v62 = vsub.f32 %v945_v16, %v981_v61  ;;  %v983_v63 = vsub.f32 %v1933_v13, %v981_v61  ;;  %v984_v0 = vsub.f32 %v947_v24, %v981_v61  ;;  %v985_v1 = vsub.f32 %v948_v21, %v981_v61 }
 0x1fd   : > { %v986_v2 = vsub.f32 %v1937_v17, %v981_v61  ;;  %v987_v3 = vsub.f32 %v1935_v14, %v981_v61  ;;  %v988_v4 = vsub.f32 %v1944_v25, %v981_v61  ;;  %v989_v5 = vsub.f32 %v1942_v22, %v981_v61 }
 0x1fe   : > { %v990_v6 = vsub.f32 %v1950_v31, %v981_v61  ;;  %v991_v7 = vsub.f32 %v1948_v29, %v981_v61  ;;  %v992_v8 = vsub.f32 %v1956_v37, %v981_v61  ;;  %v993_v9 = vsub.f32 %v1954_v35, %v981_v61 }
 0x1ff   : > { %v994_v10 = vsub.f32 %v1962_v43, %v981_v61  ;;  %v995_v11 = vsub.f32 %v1960_v41, %v981_v61  ;;  %v996_v12 = vsub.f32 %v1968_v51, %v981_v61  ;;  %v997_v13 = vsub.f32 %v1966_v48, %v981_v61 }
 0x200   : > { %v998_v14 = vmul.f32 1.442695, %v982_v62  ;;  %v1000_v15 = vmul.f32 1.442695, %v983_v63  ;;  %v1002_v16 = vmul.f32 1.442695, %v984_v0 }
 0x201   : > { %v1004_v17 = vmul.f32 1.442695, %v985_v1  ;;  %v1006_v18 = vmul.f32 1.442695, %v986_v2  ;;  %v1008_v19 = vmul.f32 1.442695, %v987_v3 }
 0x202   : > { %1640 = vpow2.f32 %v998_v14  ;;  %v1010_v20 = vmul.f32 1.442695, %v988_v4  ;;  %v1012_v21 = vmul.f32 1.442695, %v989_v5  ;;  %v1014_v24 = vmul.f32 1.442695, %v990_v6 }
 0x203   : > { %1642 = vpow2.f32 %v1000_v15  ;;  %v1016_v27 = vmul.f32 1.442695, %v991_v7  ;;  %v1018_v30 = vmul.f32 1.442695, %v992_v8  ;;  %v1020_v33 = vmul.f32 1.442695, %v993_v9 }
 0x204   : > { %1644 = vpow2.f32 %v1002_v16  ;;  %v1022_v36 = vmul.f32 1.442695, %v994_v10  ;;  %v1024_v39 = vmul.f32 1.442695, %v995_v11  ;;  %v1026_v42 = vmul.f32 1.442695, %v996_v12 }
 0x205   : > { %1646 = vpow2.f32 %v1004_v17  ;;  %v1028_v46 = vmul.f32 1.442695, %v997_v13 }
 0x206   : > { %1648 = vpow2.f32 %v1006_v18 }
 0x207   : > { %1650 = vpow2.f32 %v1008_v19 }
 0x208   : > { %1652 = vpow2.f32 %v1010_v20 }
 0x209   : > { %1654 = vpow2.f32 %v1012_v21 }
 0x20a   : > { %1656 = vpow2.f32 %v1014_v24 }
 0x20b   : > { %1658 = vpow2.f32 %v1016_v27 }
 0x20c   : > { %v1641_v22 = vpop.eup %1640  ;;  %1660 = vpow2.f32 %v1018_v30 }
 0x20d   : > { %v1643_v23 = vpop.eup %1642  ;;  %1662 = vpow2.f32 %v1020_v33 }
 0x20e   : > { %v1030_v25 = vadd.f32 %v1643_v23, %v1641_v22  ;;  %v1645_v26 = vpop.eup %1644  ;;  %1664 = vpow2.f32 %v1022_v36 }
 0x20f   : > { %v1647_v29 = vpop.eup %1646  ;;  %1666 = vpow2.f32 %v1024_v39 }
 0x210   : > { %v1031_v28 = vadd.f32 %v1645_v26, %v1030_v25  ;;  %v1649_v32 = vpop.eup %1648  ;;  %1668 = vpow2.f32 %v1026_v42 }
 0x211   : > { %v1651_v35 = vpop.eup %1650  ;;  %1670 = vpow2.f32 %v1028_v46 }
 0x212   : > { %v1032_v31 = vadd.f32 %v1647_v29, %v1031_v28  ;;  %v1653_v38 = vpop.eup %1652 }
 0x213   : > { %v1655_v41 = vpop.eup %1654 }
 0x214   : > { %v1033_v34 = vadd.f32 %v1649_v32, %v1032_v31  ;;  %v1657_v45 = vpop.eup %1656  ;;  %v1143_v31 = vld [vmem:[%s2052_s8] sm:$0xff] }
 0x215   : > { %v1659_v48 = vpop.eup %1658 }
 0x216   : > { %v1034_v37 = vadd.f32 %v1651_v35, %v1033_v34  ;;  %v1661_v50 = vpop.eup %1660 }
 0x217   : > { %v1663_v52 = vpop.eup %1662 }
 0x218   : > { %v1035_v40 = vadd.f32 %v1653_v38, %v1034_v37  ;;  %v1665_v54 = vpop.eup %1664 }
 0x219   : > { %v1667_v56 = vpop.eup %1666 }
 0x21a   : > { %v1036_v43 = vadd.f32 %v1655_v41, %v1035_v40  ;;  %v1669_v58 = vpop.eup %1668 }
 0x21b   : > { %v1671_v60 = vpop.eup %1670 }
 0x21c   : > { %v1037_v47 = vadd.f32 %v1657_v45, %v1036_v43 }
 0x21e   : > { %v1038_v49 = vadd.f32 %v1659_v48, %v1037_v47 }
 0x220   : > { %v1039_v51 = vadd.f32 %v1661_v50, %v1038_v49 }
 0x222   : > { %v1040_v53 = vadd.f32 %v1663_v52, %v1039_v51 }
 0x224   : > { %v1041_v55 = vadd.f32 %v1665_v54, %v1040_v53 }
 0x226   : > { %v1042_v57 = vadd.f32 %v1667_v56, %v1041_v55 }
 0x228   : > { %v1043_v59 = vadd.f32 %v1669_v58, %v1042_v57 }
 0x22a   : > { %v1044_v61 = vadd.f32 %v1671_v60, %v1043_v59 }
 0x22c   : > { %v1045_v62 = vrot.slane %v1044_v61, 4 }
 0x22e   : > { %v1046_v63 = vadd.f32 %v1045_v62, %v1044_v61 }
 0x230   : > { %v1047_v0 = vrot.slane %v1046_v63, 2 }
 0x232   : > { %v1048_v1 = vadd.f32 %v1047_v0, %v1046_v63 }
 0x234   : > { %v1049_v2 = vrot.slane %v1048_v1, 1 }
 0x236   : > { %v1050_v3 = vadd.f32 %v1049_v2, %v1048_v1 }
 0x238   : > { %1672 = vrcp.f32 %v1050_v3 }
 0x242   : > { %v1673_v4 = vpop.eup %1672 }
 0x243   : > { %v1052_v5 = vmul.f32 %v1673_v4, %v1641_v22  ;;  %v1053_v6 = vmul.f32 %v1673_v4, %v1643_v23  ;;  %v1054_v7 = vmul.f32 %v1673_v4, %v1645_v26  ;;  %v1055_v8 = vmul.f32 %v1673_v4, %v1647_v29  ;;  %v664_v29 = vpop.permute.xlu1 %663 }
 0x244   : > { %v1056_v9 = vmul.f32 %v1673_v4, %v1649_v32  ;;  %v1057_v10 = vmul.f32 %v1673_v4, %v1651_v35  ;;  %v1058_v11 = vmul.f32 %v1673_v4, %v1653_v38  ;;  %v1059_v12 = vmul.f32 %v1673_v4, %v1655_v41  ;;  %v1144_v35 = vld [vmem:[%s2052_s8 + $0x8] sm:$0xff] }
 0x245   : > { %v1557_v13 = vpack.c.bf16 %v1053_v6, %v1052_v5  ;;  %v1561_v14 = vpack.c.bf16 %v1055_v8, %v1054_v7  ;;  %v1060_v15 = vmul.f32 %v1673_v4, %v1657_v45  ;;  %v1061_v16 = vmul.f32 %v1673_v4, %v1659_v48 }
 0x246   : > { %v1565_v17 = vpack.c.bf16 %v1057_v10, %v1056_v9  ;;  %v1569_v18 = vpack.c.bf16 %v1059_v12, %v1058_v11  ;;  %v1062_v19 = vmul.f32 %v1673_v4, %v1661_v50  ;;  %v1063_v20 = vmul.f32 %v1673_v4, %v1663_v52 }
 0x247   : > { %1558 = vmatprep.subr.bf16.mxu1 %v1557_v13  ;;  %v1573_v21 = vpack.c.bf16 %v1061_v16, %v1060_v15  ;;  %v1064_v24 = vmul.f32 %v1673_v4, %v1665_v54  ;;  %v1065_v25 = vmul.f32 %v1673_v4, %v1667_v56  ;;  %v1066_v22 = vmul.f32 %v1673_v4, %v1669_v58 }
 0x248   : > { %1560 = vmatpush3.bf16.msra.mxu1 %v1557_v13  ;;  %v1577_v23 = vpack.c.bf16 %v1063_v20, %v1062_v19  ;;  %v1067_v26 = vmul.f32 %v1673_v4, %v1671_v60  ;;  %v744_v30 = vadd.f32 %v1916_v44, %v664_v29 }
 0x249   : > { %1562 = vmatprep.subr.bf16.mxu1 %v1561_v14  ;;  %v1581_v27 = vpack.c.bf16 %v1065_v25, %v1064_v24 }
 0x24a   : > { %v1585_v28 = vpack.c.bf16 %v1067_v26, %v1066_v22 }
 0x24c   : > { %1564 = vmatpush3.bf16.msra.mxu1 %v1561_v14 }
 0x24d   : > { %1566 = vmatprep.subr.bf16.mxu1 %v1565_v17 }
 0x250   : > { %1568 = vmatpush3.bf16.msra.mxu1 %v1565_v17 }
 0x251   : > { %1570 = vmatprep.subr.bf16.mxu1 %v1569_v18 }
 0x254   : > { %1572 = vmatpush3.bf16.msra.mxu1 %v1569_v18 }
 0x255   : > { %1574 = vmatprep.subr.bf16.mxu1 %v1573_v21 }
 0x258   : > { %1576 = vmatpush3.bf16.msra.mxu1 %v1573_v21 }
 0x259   : > { %1578 = vmatprep.subr.bf16.mxu1 %v1577_v23 }
 0x25c   : > { %1580 = vmatpush3.bf16.msra.mxu1 %v1577_v23 }
 0x25d   : > { %1582 = vmatprep.subr.bf16.mxu1 %v1581_v27 }
 0x260   : > { %1584 = vmatpush3.bf16.msra.mxu1 %v1581_v27 }
 0x261   : > { %1586 = vmatprep.subr.bf16.mxu1 %v1585_v28 }
 0x264   : > { %1588 = vmatpush3.bf16.msra.mxu1 %v1585_v28 }
 0x267   : > { %1537 = vmatmul.mubr.f32.vlgmr.msra.gmra.mrb[16].mxu1 %v744_v30 }
 0x268   : > { %1543 = vmatprep.mubr.msk.f32.mxu1 %vm376_vm1, %v1143_v31 }
 0x33a   : > { %v1538_v32 = vpop.f32.mrb[16].mxu1 }
 0x33b   : > { %v1134_v33 = vpop.f32.mrb[17].mxu1 }
 0x33c   : > { %v1589_v34 = vpack.c.bf16 %v1538_v32, %v1134_v33 }
 0x33e   : > { %1590 = vmatprep.subr.bf16.mxu1 %v1589_v34 }
 0x33f   : > { %1592 = vmatpush3.bf16.msra.mxu1 %v1589_v34 }
 0x342   : > { %1544 = vmatmul.mubr.msk.f32.vlgmr.msra.gmra.mrb[18].mxu1 %vm376_vm1, %v1144_v35 }
 0x415   : > { %v1545_v44 = vpop.f32.mrb[18].mxu1 }
 0x416   : > { %1227 = vst [vmem:[%s340_s14 + $0x8] sm:$0xff] %v1545_v44  ;;  %v1217_v36 = vpop.f32.mrb[19].mxu1 }
 0x417   : > { %1226 = vst [vmem:[%s340_s14] sm:$0xff] %v1217_v36 }
 0x418   : > { %1687 = shalt.err (!%p1684_p3)
}
 0x419   : > { %s1688_s28 = scalar_lea.hbm %s2001_s23, 256  ;;  %s1692_s17 = scalar_lea.hbm %s2053_s9, 512 }
 0x41a   : > { %p1689_p4 = scmp.ne.s32.totalorder %s2001_s23, %s1688_s28  ;;  %p1693_p9 = scmp.lt.u32.totalorder %s2001_s23, %s2053_s9 }
 0x41b   : > { %p1694_p10 = scmp.lt.u32.totalorder %s1692_s17, %s1688_s28  ;;  %p1696_p12 = scmp.lt.u32.totalorder %s1688_s28, %s2001_s23 }
 0x41c   : > { %p1690_p7 = pnand %p1689_p4, %p1833_p5 }
 0x41d   : > { %p1695_p11 = por %p1694_p10, %p1693_p9 }
 0x41e   : > { %p1691_p8 = pneg %p1690_p7 }
 0x41f   : > { %p1697_p13 = por %p1696_p12, %p1695_p11 }
 0x421   : > { %p1698_p0 = pnand %p1697_p13, %p1691_p8 }
 0x423   : > { %1701 = shalt.err (!%p1698_p0)
}
 0x424   : > { %s1743_s26 = smov 128   ;;  %s1744_s13 = smov 8  }
 0x425   : > { %1593 = dma.vmem_to_hbm [thread:$0]  (%p1833_p5), %s1996_s16, 256, %s2001_s23, %s2003_s24, %s1743_s26, %s1743_s26, %s1744_s13  }
 0x426 PF: > { %p1599_p1 = scmp.ge.s32.totalorder %s1736_s12, 2  ;;  %s1257_s25 = sand.u32 1, %s1724_s30  }
 0x427   : > { %s1258_s27 = scalar_lea.sflag [#allocation3], %s1257_s25 }
 0x428   : > { %p1596_p2 = pnand %p1599_p1, %p1837_p6 }
 0x42a   : > { %1719 = dma.done.wait (!%p1596_p2), %s1258_s27, 256  }
 0x42b   : > { %1721 = vsyncadd (!%p1596_p2), %s1258_s27, 4294967040  ;;  %p19_p3 = scmp.ge.s32.totalorder %s1820_s15, 4   ;;  %s2056_s30 = smov %s1728_s10 }
 0x42c   : > { %s2057_s10 = smov %s1732_s11  ;;  %s2058_s11 = smov %s1831_s18 }
 0x42d   : > { %s2059_s12 = smov %s1820_s15  ;;  %21 = sbr.rel (!%p19_p3) target bundleno = 3 (0x3), region = 94 }
 0x434   :  { %1263 = vsyncpa [#allocation3], 1 }
 0x435   :  { %1265 = vsyncpa [#allocation3 + $0x1], 1 }

</bundles_post_ra>
